<compile_context>
chip_gen: v7x
topology: tpu7x:2x2x1
jax: 0.10.0
libtpu: 0.0.40
codegen_flags: <defaults>
</compile_context>

<pallas_src>
import functools

import jax
import jax.numpy as jnp
from jax.experimental import pallas as pl
from jax.experimental.pallas import tpu as pltpu


# --------------------------------------------------------------------------
# pe table construction (mirrors the PyTorch PositionalEncoding.__init__)
# --------------------------------------------------------------------------
def make_positional_encoding(h, w, dim, dtype=jnp.float32):
    assert dim % 4 == 0
    quarter = dim // 4
    assert quarter >= 2
    yy, xx = jnp.meshgrid(jnp.arange(h), jnp.arange(w), indexing="ij")
    angle_rads = 1.0 / (1000.0 ** (jnp.arange(quarter) / (quarter - 1)))
    yv = yy.reshape(-1)[:, None] * angle_rads[None, :]
    xv = xx.reshape(-1)[:, None] * angle_rads[None, :]
    pe = jnp.concatenate(
        [jnp.sin(xv), jnp.cos(xv), jnp.sin(yv), jnp.cos(yv)], axis=1
    )
    return pe.astype(dtype)


# --------------------------------------------------------------------------
# kernel
# --------------------------------------------------------------------------
def pos_encoding_kernel(x_ref, pe_ref, o_ref):
    # x_ref: (tb, tn, D), pe_ref: (tn, D) -> broadcast add over the batch tile.
    o_ref[...] = x_ref[...] + pe_ref[...][None, :, :]


# --------------------------------------------------------------------------
# tile-size heuristics (mem-bound: big packing-aligned tiles, cdiv grids)
# --------------------------------------------------------------------------
_TARGET_BLOCK_BYTES = 8 * 1024 * 1024  # per x block (amortizes ~0.35us/step)


def _sublane_pack(dtype):
    # Rows per packed (sublane, lane) tile: 8 for 32-bit, 16 for bf16, 32 for
    # int8/fp8 -- keeps stores lane/sublane dense for sub-32-bit dtypes.
    itemsize = jnp.dtype(dtype).itemsize
    return 8 * max(1, 4 // itemsize)


def _choose_tiles(B, N, D, dtype):
    itemsize = jnp.dtype(dtype).itemsize
    pack = _sublane_pack(dtype)
    row_bytes = D * itemsize
    rows_budget = max(pack, _TARGET_BLOCK_BYTES // row_bytes)

    if N <= rows_budget:
        # A block dim equal to the full array dim is always legal (no pad).
        tn = N
    else:
        tn = max(pack, (rows_budget // pack) * pack)

    tb = max(1, min(B, _TARGET_BLOCK_BYTES // max(1, tn * row_bytes)))

    # v7x has 2 TensorCores sharing HBM: make sure a parallel grid axis has at
    # least 2 programs whenever possible so both cores get work.
    if pl.cdiv(N, tn) * pl.cdiv(B, tb) < 2:
        if B >= 2:
            tb = pl.cdiv(B, 2)                       # -> 2 batch programs
        elif N >= 2 * pack:
            tn = max(pack, pl.cdiv(pl.cdiv(N, 2), pack) * pack)  # -> 2 row programs
    return tn, tb


def _pe_block_spec(tn, d):
    # pe's block index only changes on the (outer) row-tile axis, so a single
    # buffer suffices; reclaiming its second buffer matters on v7x (64 MiB
    # VMEM).  Fall back to the default double-buffered spec on older JAX.
    index_map = lambda i, b: (i, 0)
    buffered = getattr(pl, "Buffered", None)
    if buffered is not None:
        try:
            return pl.BlockSpec((tn, d), index_map, pipeline_mode=buffered(1))
        except TypeError:
            pass
    return pl.BlockSpec((tn, d), index_map)


# --------------------------------------------------------------------------
# wrapper
# --------------------------------------------------------------------------
def positional_encoding_add(
    x,
    pe,
    *,
    in_place=False,
    row_tile=None,
    batch_tile=None,
    vmem_limit_bytes=64 * 1024 * 1024,
):
    """out = x + pe[None], x: (B, N, D), pe: (N, D).

    If in_place=True the output is aliased onto x; the caller must donate x at
    the jit boundary (donate_argnums) for the alias to avoid a defensive copy.
    """
    B, N, D = x.shape
    assert pe.shape == (N, D), (pe.shape, (N, D))
    pe = pe.astype(x.dtype)

    tn, tb = _choose_tiles(B, N, D, x.dtype)
    if row_tile is not None:
        tn = min(row_tile, N)
    if batch_tile is not None:
        tb = min(batch_tile, B)

    # Grid: rows outer, batch inner (fastest).  pe's block index depends only
    # on the row axis, so it stays resident in VMEM across the batch loop.
    # cdiv grids: Pallas masks the ragged boundary blocks -- no pad/slice.
    grid = (pl.cdiv(N, tn), pl.cdiv(B, tb))

    kwargs = {}
    if in_place:
        kwargs["input_output_aliases"] = {0: 0}

    return pl.pallas_call(
        pos_encoding_kernel,
        out_shape=jax.ShapeDtypeStruct((B, N, D), x.dtype),
        grid=grid,
        in_specs=[
            pl.BlockSpec((tb, tn, D), lambda i, b: (b, i, 0)),  # x
            _pe_block_spec(tn, D),                              # pe (batch-invariant)
        ],
        out_specs=pl.BlockSpec((tb, tn, D), lambda i, b: (b, i, 0)),
        compiler_params=pltpu.CompilerParams(
            dimension_semantics=("parallel", "parallel"),
            vmem_limit_bytes=vmem_limit_bytes,
        ),
        **kwargs,
    )(x, pe)


# --------------------------------------------------------------------------
# demo / self-check
# --------------------------------------------------------------------------
if __name__ == "__main__":
    key0, key1 = jax.random.split(jax.random.PRNGKey(0))

    # ---- case 1: module-consistent small shapes, in-place (aliased+donated)
    B, h, w, dim = 2, 8, 8, 128
    N = h * w
    x = jax.random.normal(key0, (B, N, dim), dtype=jnp.float32)
    pe = make_positional_encoding(h, w, dim, dtype=jnp.float32)
    ref = x + pe[None, :, :]

    run = jax.jit(
        functools.partial(positional_encoding_add, in_place=True),
        donate_argnums=(0,),
    )
    out = jax.block_until_ready(run(x, pe))
    assert out.shape == (B, N, dim)
    assert bool(jnp.allclose(out, ref, atol=1e-6, rtol=1e-6)), "mismatch (case 1)"

    # ---- case 2: ragged shapes (N % 8 != 0, non-divisor tiles, B % tb != 0)
    # exercises the cdiv-grid masked-boundary path (no host pad/slice).
    B2, h2, w2 = 3, 7, 7
    N2 = h2 * w2
    x2 = jax.random.normal(key1, (B2, N2, dim), dtype=jnp.float32)
    pe2 = make_positional_encoding(h2, w2, dim, dtype=jnp.float32)
    out2 = jax.block_until_ready(
        positional_encoding_add(x2, pe2, row_tile=16, batch_tile=2)
    )
    assert out2.shape == (B2, N2, dim)
    assert bool(
        jnp.allclose(out2, x2 + pe2[None, :, :], atol=1e-6, rtol=1e-6)
    ), "mismatch (case 2)"

    print("KERNEL_OK")
</pallas_src>

<mosaic_0001>
module attributes {stable_mosaic.version = 11 : i64} {
  func.func @pos_encoding_kernel(%arg0: i32, %arg1: i32, %arg2: memref<1x64x128xf32, #tpu.memory_space<vmem>>, %arg3: memref<64x128xf32, #tpu.memory_space<vmem>>, %arg4: memref<1x64x128xf32, #tpu.memory_space<vmem>>) attributes {dimension_semantics = [#tpu.dimension_semantics<parallel>, #tpu.dimension_semantics<parallel>], iteration_bounds = array<i64: 1, 2>, scalar_prefetch = 0 : i64, scratch_operands = 0 : i64, tpu.core_type = #tpu.core_type<tc>, window_params = [{transform_indices = @transform_0, window_bounds = array<i64: 1, 64, 128>}, {pipeline_mode = #tpu.pipeline_mode<synchronous>, transform_indices = @transform_1, window_bounds = array<i64: 64, 128>}, {transform_indices = @transform_2, window_bounds = array<i64: 1, 64, 128>}]} {
    %c0 = arith.constant 0 : index
    %c0_0 = arith.constant 0 : index
    %c0_1 = arith.constant 0 : index
    %0 = vector.load %arg2[%c0, %c0_0, %c0_1] : memref<1x64x128xf32, #tpu.memory_space<vmem>>, vector<1x64x128xf32>
    %c0_2 = arith.constant 0 : index
    %c0_3 = arith.constant 0 : index
    %1 = vector.load %arg3[%c0_2, %c0_3] : memref<64x128xf32, #tpu.memory_space<vmem>>, vector<64x128xf32>
    %2 = vector.shape_cast %1 : vector<64x128xf32> to vector<1x64x128xf32>
    %3 = arith.addf %0, %2 : vector<1x64x128xf32>
    %c0_4 = arith.constant 0 : index
    %c0_5 = arith.constant 0 : index
    %c0_6 = arith.constant 0 : index
    %4 = vector.load %arg4[%c0_4, %c0_5, %c0_6] : memref<1x64x128xf32, #tpu.memory_space<vmem>>, vector<1x64x128xf32>
    tpu.vector_store %arg4[%c0_4, %c0_5, %c0_6], %3 {strides = array<i32>} : memref<1x64x128xf32, #tpu.memory_space<vmem>>, vector<1x64x128xf32>,
    return
  }
  func.func @transform_0(%arg0: i32, %arg1: i32) -> (i32, i32, i32) {
    %c0_i32 = arith.constant 0 : i32
    %c0_i32_0 = arith.constant 0 : i32
    return %arg1, %arg0, %c0_i32 : i32, i32, i32
  }
  func.func @transform_1(%arg0: i32, %arg1: i32) -> (i32, i32) {
    %c0_i32 = arith.constant 0 : i32
    %c0_i32_0 = arith.constant 0 : i32
    return %arg0, %c0_i32 : i32, i32
  }
  func.func @transform_2(%arg0: i32, %arg1: i32) -> (i32, i32, i32) {
    %c0_i32 = arith.constant 0 : i32
    %c0_i32_0 = arith.constant 0 : i32
    return %arg1, %arg0, %c0_i32 : i32, i32, i32
  }
}

</mosaic_0001>

<bundles_post_ra>
// kernel: positional_encoding_add.1
= control target key start
LH: loop header
LB: loop body
LE: loop exit
PB: predicated region body
PF: predicated region fallthrough
CT: control target
= control target key end

     0   :  { %7 = vsyncpa [#allocation3], 0  ;;  %s852_s0 = inlined_call_operand.hbm [shape: f32[2,64,128], index: 0, kind: input, shape index: {}, may-alias: {0,2}]   ;;  %s853_s1 = inlined_call_operand.hbm [shape: f32[64,128], index: 1, kind: input, shape index: {}]   ;;  %s854_s2 = inlined_call_operand.hbm [shape: f32[2,64,128], index: 2, kind: output, shape index: {}, may-alias: {0,2}]  }
   0x1   :  { %9 = vsyncpa [#allocation3 + $0x1], 0 }
   0x2   :  { %10 = vsyncpa [#allocation6], 0 }
   0x3   :  { %11 = vsyncpa [#allocation4], 0 }
   0x4   :  { %13 = vsyncpa [#allocation4 + $0x1], 0  ;;  %s617_s9 = smov 0   ;;  %s619_s10 = smov 0  }
   0x5   :  { %s621_s11 = smov 0   ;;  %s623_s12 = smov 0  }
   0x6   :  { %s625_s13 = smov 0   ;;  %s627_s14 = smov 0  }
   0x7 LB: > { %s353_s15 = sadd.s32 4294967295, %s593_s14   ;;  %s354_s16 = sadd.s32 4294967294, %s593_s14   ;;  %s593_s14 = sphi %s627_s14, %s19_s14   ;;  %s589_s13 = sphi %s625_s13, %s878_s13   ;;  %s585_s12 = sphi %s623_s12, %s877_s12   ;;  %s581_s11 = sphi %s621_s11, %s876_s11   ;;  %s577_s10 = sphi %s619_s10, %s875_s10   ;;  %s573_s9 = sphi %s617_s9, %s874_s9  }
   0x8   : > { %p53_p0 = scmp.ne.s32.totalorder %s577_s10, %s573_s9  ;;  %p651_p1 = scmp.eq.s32.totalorder %s353_s15, 0 }
   0x9   : > { %p655_p2 = scmp.eq.s32.totalorder %s353_s15, 1  ;;  %p111_p3 = scmp.eq.s32.totalorder %s354_s16, 1 }
   0xa   : > { %s859_s17 = scalar_select %p651_p1, 1, 0 }
   0xb   : > { %s860_s18 = scalar_select %p655_p2, 1, 0 }
   0xc   : > { %p661_p4 = por %p651_p1, %p53_p0  ;;  %p355_p5 = scmp.ge.s32.totalorder %s593_s14, 1 }
   0xd   : > { %p666_p6 = por %p111_p3, %p53_p0  ;;  %p118_p7 = scmp.lt.s32.totalorder %s593_s14, 3 }
   0xe   : > { %s861_s19 = scalar_select %p661_p4, 1, 0 }
   0xf   : > { %s862_s20 = scalar_select %p666_p6, 1, 0 }
  0x10   : > { %p671_p8 = pnand %p355_p5, %p118_p7  ;;  %s595_s22 = smov [#allocation5]  }
  0x11   : > { %s133_s23 = sshll.u32 %s595_s22, 4  ;;  %s28_s25 = sadd.s32 1, %s589_s13  ;;  %s134_s23 = int_to_ptr.vmem [resolvable:$true] %s133_s23 }
  0x12   : > { %s863_s21 = scalar_select %p671_p8, 1, 0 }
  0x13   : > { %p380_p9 = pneg %p671_p8  ;;  %s449_s28 = scalar_lea.hbm %s853_s1, 1024 }
  0x14   : > { %p450_p12 = scmp.ne.s32.totalorder %s853_s1, %s449_s28  ;;  %p456_p5 = scmp.lt.u32.totalorder %s449_s28, %s853_s1 }
  0x15   : > { %p680_p11 = pnand %p380_p9, %p651_p1 }
  0x17   : > { %p451_p13 = pneg %p680_p11 }
  0x19   : > { %p452_p0 = pnand %p451_p13, %p450_p12 }
  0x1b   : > { %p453_p3 = pneg %p452_p0 }
  0x1d   : > { %p458_p7 = pnand %p456_p5, %p453_p3 }
  0x1f   : > { %461 = shalt.err (!%p458_p7)
}
  0x20   : > { %s462_s5 = scalar_lea.vmem %s134_s23, 1024  ;;  %p470_p1 = scmp.lt.s32.totalorder %s134_s23, %s134_s23 }
  0x21   : > { %p463_p9 = scmp.ne.s32.totalorder %s134_s23, %s462_s5  ;;  %p471_p4 = scmp.lt.s32.totalorder %s462_s5, %s462_s5 }
  0x23   : > { %p465_p10 = pnand %p463_p9, %p451_p13  ;;  %p472_p8 = por %p471_p4, %p470_p1 }
  0x25   : > { %p466_p6 = pneg %p465_p10 }
  0x27   : > { %p473_p2 = pnand %p472_p8, %p466_p6 }
  0x29   : > { %476 = shalt.err (!%p473_p2)
}
  0x2a   : > { %s596_s6 = smov 128   ;;  %s597_s7 = smov 8  }
  0x2b   : > { %383 = dma.hbm_to_vmem [thread:$0]  (!%p680_p11), %s853_s1, 1024, %s134_s23, [#allocation6], %s596_s6, %s596_s6, %s597_s7  }
  0x2c   : > { %p29_p1 = scmp.ge.s32.totalorder %s28_s25, 2  ;;  %s40_s16 = sadd.s32 1, %s581_s11 }
  0x2d   : > { %p47_p2 = scmp.ne.s32.totalorder %s581_s11, %s577_s10  ;;  %p48_p4 = scmp.eq.s32.totalorder %s593_s14, 0 }
  0x2e   : > { %s880_s25 = smov (%p29_p1, %s28_s25), 0  ;;  %p866_p8 = scmp.ne.s32.totalorder %s860_s18, 0 }
  0x2f   : > { %p710_p6 = por %p48_p4, %p47_p2  ;;  %s35_s26 = ssub.s32 %s589_s13, %s880_s25 }
  0x30   : > { %p716_p10 = por %p866_p8, %p47_p2  ;;  %p393_p12 = scmp.lt.s32.totalorder %s593_s14, 2 }
  0x31   : > { %p38_p11 = scmp.eq.s32.totalorder %s35_s26, 0  ;;  %s147_s23 = sand.u32 1, %s581_s11  }
  0x32   : > { %s358_s27 = sshll.u32 %s147_s23, 6  ;;  %s370_s29 = sshll.u32 %s589_s13, 10 }
  0x33   : > { %s725_s28 = scalar_select %p38_p11, %s581_s11, %s40_s16  }
  0x34   : > { %s731_s4 = scalar_lea.hbm %s852_s0, %s370_s29  ;;  %s151_s18 = scalar_lea.vmem [#allocation2], %s358_s27 }
  0x35   : > { %s160_s5 = sshll.u32 %s151_s18, 4  ;;  %p737_p13 = pnand %p393_p12, %p710_p6  ;;  %s733_s5 = int_to_ptr.vmem [resolvable:$true] %s160_s5 }
  0x36   : > { %s741_s15 = scalar_lea.sflag [#allocation3], %s147_s23  ;;  %s477_s16 = scalar_lea.hbm %s731_s4, 1024 }
  0x37   : > { %p478_p0 = scmp.ne.s32.totalorder %s731_s4, %s477_s16  ;;  %p479_p3 = pneg %p737_p13 }
  0x38   : > { %s482_s22 = scalar_lea.hbm %s852_s0, 2048  ;;  %p483_p9 = scmp.lt.u32.totalorder %s731_s4, %s852_s0 }
  0x39   : > { %p480_p5 = pnand %p479_p3, %p478_p0  ;;  %p484_p1 = scmp.lt.u32.totalorder %s482_s22, %s477_s16 }
  0x3a   : > { %p486_p4 = scmp.lt.u32.totalorder %s477_s16, %s731_s4 }
  0x3b   : > { %p481_p7 = pneg %p480_p5  ;;  %p485_p2 = por %p484_p1, %p483_p9 }
  0x3d   : > { %p487_p6 = por %p486_p4, %p485_p2 }
  0x3f   : > { %p488_p8 = pnand %p487_p6, %p481_p7 }
  0x41   : > { %491 = shalt.err (!%p488_p8)
}
  0x42   : > { %s492_s23 = scalar_lea.vmem %s733_s5, 1024  ;;  %s598_s3 = smov [#allocation2]  }
  0x43   : > { %p493_p12 = scmp.ne.s32.totalorder %s733_s5, %s492_s23  ;;  %s497_s18 = sshll.u32 %s598_s3, 4  ;;  %s498_s18 = int_to_ptr.vmem [resolvable:$false] %s497_s18 }
  0x44   : > { %s499_s26 = scalar_lea.vmem %s498_s18, 2048  ;;  %p500_p5 = scmp.lt.s32.totalorder %s733_s5, %s498_s18 }
  0x45   : > { %p495_p11 = pnand %p493_p12, %p479_p3  ;;  %p501_p9 = scmp.lt.s32.totalorder %s499_s26, %s492_s23 }
  0x47   : > { %p496_p0 = pneg %p495_p11  ;;  %p502_p1 = por %p501_p9, %p500_p5 }
  0x49   : > { %p503_p2 = pnand %p502_p1, %p496_p0 }
  0x4b   : > { %506 = shalt.err (!%p503_p2)
}
  0x4c   : > { %387 = dma.hbm_to_vmem [thread:$0]  (!%p737_p13), %s731_s4, 1024, %s733_s5, %s741_s15, %s596_s6, %s596_s6, %s597_s7  }
  0x4d   : > { %p869_p3 = scmp.ne.s32.totalorder %s863_s21, 0 }
  0x4e   : > { %s775_s16 = sand.u32 (!%p869_p3), 1, %s577_s10   ;;  %p870_p7 = scmp.ne.s32.totalorder (!%p869_p3), %s861_s19, 0 }
  0x4f   : > { %172 = sbr.rel (%p869_p3) target bundleno = 116 (0x74), region = 28  ;;  %s362_s27 = sshll.u32 (!%p869_p3), %s775_s16, 6 }
  0x50   : > { %s175_s22 = scalar_lea.sflag (!%p869_p3), [#allocation3], %s775_s16  ;;  %s779_s29 = scalar_lea.vmem (!%p869_p3), [#allocation2], %s362_s27 }
  0x56   : > { %560 = dma.done.wait (%p870_p7), %s175_s22, 1024  }
  0x57   : > { %562 = vsyncadd (%p870_p7), %s175_s22, 4294966272  ;;  %p871_p13 = scmp.ne.s32.totalorder %s859_s17, 0 }
  0x59   : > { %564 = dma.done.wait (%p871_p13), [#allocation6], 1024  }
  0x5a   : > { %566 = vsyncadd (%p871_p13), [#allocation6], 4294966272  ;;  %v206_v0 = vld [vmem:[%s779_s29] sm:$0xff]  ;;  %v207_v2 = vld [vmem:[%s779_s29 + $0x8] sm:$0xff]  ;;  %s202_s19 = scalar_lea.vmem [#allocation7], %s362_s27  ;;  %s371_s17 = sshll.u32 %s585_s12, 10 }
  0x5b   : > { %v214_v1 = vld [vmem:[#allocation5] sm:$0xff]  ;;  %v215_v4 = vld [vmem:[#allocation5 + $0x8] sm:$0xff]  ;;  %v208_v5 = vld [vmem:[%s779_s29 + $0x10] sm:$0xff]  ;;  %s254_s21 = sshll.u32 %s202_s19, 4  ;;  %s803_s7 = scalar_lea.hbm %s854_s2, %s371_s17  ;;  %s798_s21 = int_to_ptr.vmem [resolvable:$true] %s254_s21 }
  0x5c   : > { %v222_v3 = vadd.f32 %v214_v1, %v206_v0  ;;  %v216_v6 = vld [vmem:[#allocation5 + $0x10] sm:$0xff]  ;;  %v223_v7 = vadd.f32 %v215_v4, %v207_v2  ;;  %v209_v9 = vld [vmem:[%s779_s29 + $0x18] sm:$0xff]  ;;  %v210_v11 = vld [vmem:[%s779_s29 + $0x20] sm:$0xff]  ;;  %s239_s4 = scalar_lea.sflag [#allocation4], %s775_s16  ;;  %s507_s5 = scalar_lea.vmem %s798_s21, 1024 }
  0x5d   : > { %v224_v8 = vadd.f32 %v216_v6, %v208_v5  ;;  %v217_v10 = vld [vmem:[#allocation5 + $0x18] sm:$0xff]  ;;  %v218_v13 = vld [vmem:[#allocation5 + $0x20] sm:$0xff]  ;;  %v211_v14 = vld [vmem:[%s779_s29 + $0x28] sm:$0xff]  ;;  %p508_p4 = scmp.ne.s32.totalorder %s798_s21, %s507_s5  ;;  %s599_s8 = smov [#allocation7]  }
  0x5e   : > { %230 = vst [vmem:[%s202_s19] sm:$0xff] %v222_v3  ;;  %v225_v12 = vadd.f32 %v217_v10, %v209_v9  ;;  %v219_v15 = vld [vmem:[#allocation5 + $0x28] sm:$0xff]  ;;  %231 = vst [vmem:[%s202_s19 + $0x8] sm:$0xff] %v223_v7  ;;  %v226_v16 = vadd.f32 %v218_v13, %v210_v11  ;;  %v212_v18 = vld [vmem:[%s779_s29 + $0x30] sm:$0xff]  ;;  %s511_s15 = sshll.u32 %s599_s8, 4  ;;  %s512_s15 = int_to_ptr.vmem [resolvable:$false] %s511_s15 }
  0x5f   : > { %232 = vst [vmem:[%s202_s19 + $0x10] sm:$0xff] %v224_v8  ;;  %v227_v17 = vadd.f32 %v219_v15, %v211_v14  ;;  %v220_v19 = vld [vmem:[#allocation5 + $0x30] sm:$0xff]  ;;  %v213_v20 = vld [vmem:[%s779_s29 + $0x38] sm:$0xff]  ;;  %p509_p6 = pnand %p508_p4, %p716_p10  ;;  %s513_s30 = scalar_lea.vmem %s512_s15, 2048 }
  0x60   : > { %233 = vst [vmem:[%s202_s19 + $0x18] sm:$0xff] %v225_v12  ;;  %v228_v21 = vadd.f32 %v220_v19, %v212_v18  ;;  %v221_v22 = vld [vmem:[#allocation5 + $0x38] sm:$0xff]  ;;  %234 = vst [vmem:[%s202_s19 + $0x20] sm:$0xff] %v226_v16  ;;  %p514_p12 = scmp.lt.s32.totalorder %s798_s21, %s512_s15  ;;  %p515_p11 = scmp.lt.s32.totalorder %s513_s30, %s507_s5 }
  0x61   : > { %235 = vst [vmem:[%s202_s19 + $0x28] sm:$0xff] %v227_v17  ;;  %v229_v23 = vadd.f32 %v221_v22, %v213_v20  ;;  %p510_p8 = pneg %p509_p6 }
  0x62   : > { %236 = vst [vmem:[%s202_s19 + $0x30] sm:$0xff] %v228_v21  ;;  %p516_p0 = por %p515_p11, %p514_p12 }
  0x63   : > { %237 = vst [vmem:[%s202_s19 + $0x38] sm:$0xff] %v229_v23 }
  0x64   : > { %p517_p5 = pnand %p516_p0, %p510_p8 }
  0x66   : > { %520 = shalt.err (!%p517_p5)
}
  0x67   : > { %s521_s23 = scalar_lea.hbm %s803_s7, 1024  ;;  %s525_s26 = scalar_lea.hbm %s854_s2, 2048 }
  0x68   : > { %p522_p9 = scmp.ne.s32.totalorder %s803_s7, %s521_s23  ;;  %p526_p3 = scmp.lt.u32.totalorder %s803_s7, %s854_s2 }
  0x69   : > { %p527_p7 = scmp.lt.u32.totalorder %s525_s26, %s521_s23  ;;  %p529_p4 = scmp.lt.u32.totalorder %s521_s23, %s803_s7 }
  0x6a   : > { %p523_p1 = pnand %p522_p9, %p716_p10 }
  0x6b   : > { %p528_p13 = por %p527_p7, %p526_p3 }
  0x6c   : > { %p524_p2 = pneg %p523_p1 }
  0x6d   : > { %p530_p6 = por %p529_p4, %p528_p13 }
  0x6f   : > { %p531_p8 = pnand %p530_p6, %p524_p2 }
  0x71   : > { %534 = shalt.err (!%p531_p8)
}
  0x72   : > { %s600_s29 = smov 128   ;;  %s601_s19 = smov 8  }
  0x73   : > { %378 = dma.vmem_to_hbm [thread:$0]  (%p716_p10), %s798_s21, 1024, %s803_s7, %s239_s4, %s600_s29, %s600_s29, %s601_s19  }
  0x74 PF: > { %s269_s17 = sand.u32 1, %s573_s9   ;;  %p872_p12 = scmp.ne.s32.totalorder %s862_s20, 0 }
  0x75   : > { %p873_p11 = scmp.ge.s32.totalorder %s593_s14, 2  ;;  %s270_s12 = scalar_lea.sflag [#allocation4], %s269_s17 }
  0x77   : > { %p389_p0 = pnand %p873_p11, %p872_p12 }
  0x79   : > { %568 = dma.done.wait (!%p389_p0), %s270_s12, 1024  }
  0x7a   : > { %570 = vsyncadd (!%p389_p0), %s270_s12, 4294966272  ;;  %s19_s14 = sadd.s32 1, %s593_s14   ;;  %s874_s9 = smov %s577_s10 }
  0x7b   : > { %p16_p5 = scmp.ge.s32.totalorder %s19_s14, 4   ;;  %s875_s10 = smov %s581_s11 }
  0x7c   : > { %s876_s11 = smov %s725_s28  ;;  %s877_s12 = smov %s589_s13 }
  0x7d   : > { %s878_s13 = smov %s880_s25  ;;  %18 = sbr.rel (!%p16_p5) target bundleno = 7 (0x7), region = 78 }
  0x84   :  { %275 = vsyncpa [#allocation3], 1 }
  0x85   :  { %277 = vsyncpa [#allocation3 + $0x1], 1 }
  0x86   :  { %278 = vsyncpa [#allocation6], 1 }
  0x87   :  { %279 = vsyncpa [#allocation4], 1 }
  0x88   :  { %281 = vsyncpa [#allocation4 + $0x1], 1 }

</bundles_post_ra>
